<compile_context>
chip_gen: v7x
topology: tpu7x:2x2x1
jax: 0.10.0
libtpu: 0.0.40
codegen_flags: <defaults>
</compile_context>

<pallas_src>
import functools

import jax
import jax.numpy as jnp
from jax import lax
from jax.experimental import pallas as pl
from jax.experimental.pallas import tpu as pltpu


def _bce_block_sum_kernel(pred_ref, mask_ref, out_ref, *, nc, bn, need_mask):
    """Partial sum of elementwise BCE-with-logits over one (bn, H, W) block."""
    x = pred_ref[...].astype(jnp.float32)   # logits (native dtype DMA'd, f32 math)
    t = mask_ref[...].astype(jnp.float32)   # targets
    # Numerically stable BCE-with-logits: max(x, 0) - x*t + log1p(exp(-|x|)).
    bce = jnp.maximum(x, 0.0) - x * t + jnp.log1p(jnp.exp(-jnp.abs(x)))
    if need_mask:
        # Final grid step may extend past NC images: zero the out-of-range rows
        # (select, not multiply, so garbage NaN/inf in the OOB region is dropped).
        img = pl.program_id(0) * bn + lax.broadcasted_iota(jnp.int32, bce.shape, 0)
        bce = jnp.where(img < nc, bce, 0.0)
    out_ref[0, 0] = jnp.sum(bce)


def structure_loss(pred, mask, *, block_images=8):
    """Pallas/TPU implementation of the PyTorch `structure_loss` module.

    pred, mask: (N, C, H, W) arrays (NCHW, same as PyTorch). Any float dtype;
    inputs are DMA'd in their native dtype and the math runs in f32.
    Returns a scalar float32 loss.
    """
    assert pred.shape == mask.shape, "pred/mask must have identical shapes"
    N, C, H, W = pred.shape
    NC = N * C

    # No host-side upcast: keep native dtype (halves HBM traffic for bf16).
    p = pred.reshape(NC, H, W)
    m = mask.reshape(NC, H, W)

    # Several images per grid step to amortize the ~0.35 us/step pipeline
    # overhead.  VMEM use = 2 inputs x 2 buffers x bn*H*W*itemsize; bn=8 at
    # 352x352 f32 is ~16 MiB, comfortably inside v7x's 64 MiB VMEM as well.
    bn = max(1, min(block_images, NC))
    grid = (pl.cdiv(NC, bn),)
    need_mask = (NC % bn) != 0

    kernel = functools.partial(_bce_block_sum_kernel, nc=NC, bn=bn,
                               need_mask=need_mask)

    partial_sums = pl.pallas_call(
        kernel,
        out_shape=jax.ShapeDtypeStruct((grid[0], 1), jnp.float32),
        grid=grid,
        in_specs=[
            pl.BlockSpec((bn, H, W), lambda i: (i, 0, 0)),   # pred block
            pl.BlockSpec((bn, H, W), lambda i: (i, 0, 0)),   # mask block
        ],
        # One scalar partial sum per grid step; blocked SMEM output so each
        # TensorCore writes disjoint blocks under "parallel" semantics.
        out_specs=pl.BlockSpec((1, 1), lambda i: (i, 0),
                               memory_space=pltpu.MemorySpace.SMEM),
        compiler_params=pltpu.CompilerParams(
            dimension_semantics=("parallel",),
            vmem_limit_bytes=48 * 1024 * 1024),
    )(p, m)

    # Legacy reduce='none' -> reduction='mean': wbce is the scalar mean BCE.
    wbce = jnp.sum(partial_sums) / jnp.float32(NC * H * W)
    # (weit * wbce).sum(dim=(2,3)) / weit.sum(dim=(2,3)) with scalar wbce is
    # identically wbce per image (up to fp rounding), and so is its .mean():
    # the avg-pool / weit path cancels and is intentionally elided here.
    return wbce


def _reference_structure_loss(pred, mask):
    """Pure-JAX transcription of the literal PyTorch module (incl. weit path)."""
    p = pred.astype(jnp.float32)
    m = mask.astype(jnp.float32)
    # F.avg_pool2d(mask, 31, stride=1, padding=15), count_include_pad=True.
    win = lax.reduce_window(m, 0.0, lax.add, (1, 1, 31, 31), (1, 1, 1, 1),
                            [(0, 0), (0, 0), (15, 15), (15, 15)])
    pooled = win / (31.0 * 31.0)
    weit = 1.0 + 5.0 * jnp.abs(pooled - m)
    bce = jnp.maximum(p, 0.0) - p * m + jnp.log1p(jnp.exp(-jnp.abs(p)))
    wbce = jnp.mean(bce)                       # legacy reduce='none' -> 'mean'
    per_img = (weit * wbce).sum(axis=(2, 3)) / weit.sum(axis=(2, 3))
    return per_img.mean()


if __name__ == "__main__":
    # Config 1: f32 inputs, grid divides evenly.
    key = jax.random.PRNGKey(0)
    kp, km = jax.random.split(key)
    N, C, H, W = 2, 1, 32, 32
    pred = jax.random.normal(kp, (N, C, H, W), dtype=jnp.float32)           # logits
    mask = jax.random.bernoulli(km, 0.5, (N, C, H, W)).astype(jnp.float32)  # binary

    loss = structure_loss(pred, mask)
    ref = _reference_structure_loss(pred, mask)
    jax.block_until_ready((loss, ref))
    assert loss.shape == () and jnp.isfinite(loss)
    assert jnp.allclose(loss, ref, rtol=1e-4, atol=1e-6), (loss, ref)

    # Config 2: bf16 inputs (native-dtype DMA) and a ragged final grid block
    # (NC=6 with block_images=4) to exercise the in-kernel tail masking.
    kp2, km2 = jax.random.split(jax.random.PRNGKey(1))
    N2, C2, H2, W2 = 2, 3, 32, 32
    pred2 = jax.random.normal(kp2, (N2, C2, H2, W2), dtype=jnp.bfloat16)
    mask2 = jax.random.bernoulli(km2, 0.5, (N2, C2, H2, W2)).astype(jnp.bfloat16)

    loss2 = structure_loss(pred2, mask2, block_images=4)
    ref2 = _reference_structure_loss(pred2, mask2)
    jax.block_until_ready((loss2, ref2))
    assert loss2.shape == () and jnp.isfinite(loss2)
    assert jnp.allclose(loss2, ref2, rtol=1e-3, atol=1e-4), (loss2, ref2)

    print("KERNEL_OK")
</pallas_src>

<mosaic_0001>
module attributes {stable_mosaic.version = 11 : i64} {
  func.func @_bce_block_sum_kernel(%arg0: i32, %arg1: memref<2x32x32xf32, #tpu.memory_space<vmem>>, %arg2: memref<2x32x32xf32, #tpu.memory_space<vmem>>, %arg3: memref<1x1xf32, #tpu.memory_space<smem>>) attributes {dimension_semantics = [#tpu.dimension_semantics<parallel>], iteration_bounds = array<i64: 1>, scalar_prefetch = 0 : i64, scratch_operands = 0 : i64, tpu.core_type = #tpu.core_type<tc>, window_params = [{transform_indices = @transform_0, window_bounds = array<i64: 2, 32, 32>}, {transform_indices = @transform_1, window_bounds = array<i64: 2, 32, 32>}, {transform_indices = @transform_2, window_bounds = array<i64: 1, 1>}]} {
    %c0 = arith.constant 0 : index
    %c0_0 = arith.constant 0 : index
    %c0_1 = arith.constant 0 : index
    %0 = vector.load %arg1[%c0, %c0_0, %c0_1] : memref<2x32x32xf32, #tpu.memory_space<vmem>>, vector<2x32x32xf32>
    %c0_2 = arith.constant 0 : index
    %c0_3 = arith.constant 0 : index
    %c0_4 = arith.constant 0 : index
    %1 = vector.load %arg2[%c0_2, %c0_3, %c0_4] : memref<2x32x32xf32, #tpu.memory_space<vmem>>, vector<2x32x32xf32>
    %cst = arith.constant 0.000000e+00 : f32
    %2 = vector.broadcast %cst : f32 to vector<2x32x32xf32>
    %3 = arith.maximumf %0, %2 : vector<2x32x32xf32>
    %4 = arith.mulf %0, %1 : vector<2x32x32xf32>
    %5 = arith.subf %3, %4 : vector<2x32x32xf32>
    %6 = math.absf %0 : vector<2x32x32xf32>
    %cst_5 = arith.constant 0.000000e+00 : f32
    %7 = vector.broadcast %cst_5 : f32 to vector<2x32x32xf32>
    %8 = arith.subf %7, %6 : vector<2x32x32xf32>
    %9 = math.exp %8 : vector<2x32x32xf32>
    %10 = math.log1p %9 : vector<2x32x32xf32>
    %11 = arith.addf %5, %10 : vector<2x32x32xf32>
    %12 = vector.shape_cast %11 : vector<2x32x32xf32> to vector<1x2x32x32xf32>
    %cst_6 = arith.constant dense<0.000000e+00> : vector<1xf32>
    %13 = vector.multi_reduction <add>, %12, %cst_6 [1, 2, 3] : vector<1x2x32x32xf32> to vector<1xf32>
    %14 = vector.shape_cast %13 : vector<1xf32> to vector<1x1x1x1xf32>
    %15 = vector.extract %14[0, 0, 0, 0] : f32 from vector<1x1x1x1xf32>
    %c0_7 = arith.constant 0 : index
    %c0_8 = arith.constant 0 : index
    %16 = memref.load %arg3[%c0_7, %c0_8] : memref<1x1xf32, #tpu.memory_space<smem>>
    memref.store %15, %arg3[%c0_7, %c0_8] : memref<1x1xf32, #tpu.memory_space<smem>>
    return
  }
  func.func @transform_0(%arg0: i32) -> (i32, i32, i32) {
    %c0_i32 = arith.constant 0 : i32
    %c0_i32_0 = arith.constant 0 : i32
    %c0_i32_1 = arith.constant 0 : i32
    return %arg0, %c0_i32, %c0_i32_0 : i32, i32, i32
  }
  func.func @transform_1(%arg0: i32) -> (i32, i32, i32) {
    %c0_i32 = arith.constant 0 : i32
    %c0_i32_0 = arith.constant 0 : i32
    %c0_i32_1 = arith.constant 0 : i32
    return %arg0, %c0_i32, %c0_i32_0 : i32, i32, i32
  }
  func.func @transform_2(%arg0: i32) -> (i32, i32) {
    %c0_i32 = arith.constant 0 : i32
    %c0_i32_0 = arith.constant 0 : i32
    return %arg0, %c0_i32 : i32, i32
  }
}

</mosaic_0001>

<bundles_post_ra>
// kernel: tpu_custom_call.1
= control target key start
LH: loop header
LB: loop body
LE: loop exit
PB: predicated region body
PF: predicated region fallthrough
CT: control target
= control target key end

     0   :  { %7 = vsyncpa [#allocation3], 0  ;;  %s508_s0 = inlined_call_operand.hbm [shape: f32[2,32,32], index: 0, kind: input, shape index: {}]   ;;  %s509_s1 = inlined_call_operand.hbm [shape: f32[2,32,32], index: 1, kind: input, shape index: {}]   ;;  %s510_s2 = inlined_call_operand.hbm [shape: f32[1,1], index: 2, kind: output, shape index: {}]  }
   0x1   :  { %8 = vsyncpa [#allocation6], 0 }
   0x2   :  { %9 = vsyncpa [#allocation4], 0  ;;  %s333_s9 = smov [#allocation2]   ;;  %s273_s13 = scalar_lea.hbm %s508_s0, 1024 }
   0x3   :  { %s15_s10 = sshll.u32 %s333_s9, 4  ;;  %p274_p0 = scmp.ne.s32.totalorder %s508_s0, %s273_s13  ;;  %s16_s10 = int_to_ptr.vmem [resolvable:$true] %s15_s10 }
   0x4   :  { %p277_p1 = scmp.lt.u32.totalorder %s273_s13, %s508_s0 }
   0x6   :  { %p279_p2 = pnand %p277_p1, %p274_p0 }
   0x8   :  { %282 = shalt.err (!%p279_p2)
}
   0x9   :  { %s283_s18 = scalar_lea.vmem %s16_s10, 1024  ;;  %p288_p4 = scmp.lt.s32.totalorder %s16_s10, %s16_s10 }
   0xa   :  { %p284_p3 = scmp.ne.s32.totalorder %s16_s10, %s283_s18  ;;  %p289_p5 = scmp.lt.s32.totalorder %s283_s18, %s283_s18 }
   0xc   :  { %p290_p6 = por %p289_p5, %p288_p4 }
   0xe   :  { %p291_p7 = pnand %p290_p6, %p284_p3 }
  0x10   :  { %294 = shalt.err (!%p291_p7)
}
  0x11   :  { %s334_s19 = smov 128   ;;  %s335_s20 = smov 8  }
  0x12   :  { %21 = dma.hbm_to_vmem [thread:$0]  %s508_s0, 1024, %s16_s10, [#allocation3], %s334_s19, %s334_s19, %s335_s20  }
  0x13   :  { %s336_s23 = smov [#allocation5]   ;;  %s295_s27 = scalar_lea.hbm %s509_s1, 1024 }
  0x14   :  { %s27_s24 = sshll.u32 %s336_s23, 4  ;;  %p296_p8 = scmp.ne.s32.totalorder %s509_s1, %s295_s27  ;;  %s28_s24 = int_to_ptr.vmem [resolvable:$true] %s27_s24 }
  0x15   :  { %p299_p9 = scmp.lt.u32.totalorder %s295_s27, %s509_s1 }
  0x17   :  { %p301_p10 = pnand %p299_p9, %p296_p8 }
  0x19   :  { %304 = shalt.err (!%p301_p10)
}
  0x1a   :  { %s305_s4 = scalar_lea.vmem %s28_s24, 1024  ;;  %p310_p12 = scmp.lt.s32.totalorder %s28_s24, %s28_s24 }
  0x1b   :  { %p306_p11 = scmp.ne.s32.totalorder %s28_s24, %s305_s4  ;;  %p311_p13 = scmp.lt.s32.totalorder %s305_s4, %s305_s4 }
  0x1d   :  { %p312_p0 = por %p311_p13, %p310_p12 }
  0x1f   :  { %p313_p1 = pnand %p312_p0, %p306_p11 }
  0x21   :  { %316 = shalt.err (!%p313_p1)
}
  0x22   :  { %33 = dma.hbm_to_vmem [thread:$0]  %s509_s1, 1024, %s28_s24, [#allocation6], %s334_s19, %s334_s19, %s335_s20  }
  0x23   :  { %327 = dma.done.wait [#allocation3], 1024  }
  0x24   :  { %328 = vsyncadd [#allocation3], 4294966272 }
  0x25   :  { %329 = dma.done.wait [#allocation6], 1024  }
  0x26   :  { %330 = vsyncadd [#allocation6], 4294966272  ;;  %v377_v0 = vld [vmem:[#allocation2] sm:$0xff]  ;;  %v379_v1 = vld [vmem:[#allocation2 + $0x8] sm:$0xff]  ;;  %vm192_vm1 = vcmask 261120   ;;  %s317_s8 = scalar_lea.hbm %s510_s2, 16 }
  0x27   :  { %v381_v2 = vld [vmem:[#allocation2 + $0x10] sm:$0xff]  ;;  %v383_v3 = vld [vmem:[#allocation2 + $0x18] sm:$0xff]  ;;  %v385_v4 = vld [vmem:[#allocation2 + $0x20] sm:$0xff]  ;;  %v80_v7 = vand.u32 2147483647, %v377_v0  ;;  %v56_v36 = vmax.f32 %v377_v0, 0.0  ;;  %p318_p2 = scmp.ne.s32.totalorder %s510_s2, %s317_s8  ;;  %p321_p3 = scmp.lt.u32.totalorder %s317_s8, %s510_s2 }
  0x28   :  { %v387_v5 = vld [vmem:[#allocation2 + $0x28] sm:$0xff]  ;;  %v389_v6 = vld [vmem:[#allocation2 + $0x30] sm:$0xff]  ;;  %v392_v8 = vld [vmem:[#allocation2 + $0x38] sm:$0xff]  ;;  %v81_v9 = vand.u32 2147483647, %v379_v1  ;;  %v57_v37 = vmax.f32 %v379_v1, 0.0 }
  0x29   :  { %v82_v10 = vand.u32 2147483647, %v381_v2  ;;  %v83_v11 = vand.u32 2147483647, %v383_v3  ;;  %v84_v12 = vand.u32 2147483647, %v385_v4  ;;  %p323_p4 = pnand %p321_p3, %p318_p2 }
  0x2a   :  { %v85_v13 = vand.u32 2147483647, %v387_v5  ;;  %v86_v14 = vand.u32 2147483647, %v389_v6  ;;  %v88_v15 = vsub.f32 0.0, %v80_v7  ;;  %v89_v16 = vsub.f32 0.0, %v81_v9 }
  0x2b   :  { %v90_v17 = vsub.f32 0.0, %v82_v10  ;;  %v91_v18 = vsub.f32 0.0, %v83_v11  ;;  %v87_v19 = vand.u32 2147483647, %v392_v8  ;;  %v92_v20 = vsub.f32 0.0, %v84_v12  ;;  %v48_v32 = vld [vmem:[#allocation5] sm:$0xff] }
  0x2c   :  { %v93_v21 = vsub.f32 0.0, %v85_v13  ;;  %v96_v22 = vmul.f32 1.442695, %v88_v15  ;;  %v98_v23 = vmul.f32 1.442695, %v89_v16  ;;  %v94_v25 = vsub.f32 0.0, %v86_v14 }
  0x2d   :  { %v100_v24 = vmul.f32 1.442695, %v90_v17  ;;  %v102_v26 = vmul.f32 1.442695, %v91_v18  ;;  %v104_v27 = vmul.f32 1.442695, %v92_v20  ;;  %v64_v43 = vmul.f32 %v48_v32, %v377_v0 }
  0x2e   :  { %241 = vpow2.f32 %v96_v22  ;;  %v95_v28 = vsub.f32 0.0, %v87_v19  ;;  %v106_v29 = vmul.f32 1.442695, %v93_v21  ;;  %v108_v30 = vmul.f32 1.442695, %v94_v25  ;;  %v49_v33 = vld [vmem:[#allocation5 + $0x8] sm:$0xff] }
  0x2f   :  { %243 = vpow2.f32 %v98_v23  ;;  %v50_v34 = vld [vmem:[#allocation5 + $0x10] sm:$0xff]  ;;  %v51_v35 = vld [vmem:[#allocation5 + $0x18] sm:$0xff]  ;;  %v52_v38 = vld [vmem:[#allocation5 + $0x20] sm:$0xff]  ;;  %v58_v41 = vmax.f32 %v381_v2, 0.0  ;;  %v59_v42 = vmax.f32 %v383_v3, 0.0  ;;  %v60_v45 = vmax.f32 %v385_v4, 0.0 }
  0x30   :  { %245 = vpow2.f32 %v100_v24  ;;  %v110_v31 = vmul.f32 1.442695, %v95_v28  ;;  %v53_v39 = vld [vmem:[#allocation5 + $0x28] sm:$0xff]  ;;  %v54_v40 = vld [vmem:[#allocation5 + $0x30] sm:$0xff]  ;;  %v61_v46 = vmax.f32 %v387_v5, 0.0  ;;  %v62_v47 = vmax.f32 %v389_v6, 0.0 }
  0x31   :  { %247 = vpow2.f32 %v102_v26  ;;  %v63_v48 = vmax.f32 %v392_v8, 0.0  ;;  %v55_v50 = vld [vmem:[#allocation5 + $0x38] sm:$0xff]  ;;  %v65_v51 = vmul.f32 %v49_v33, %v379_v1  ;;  %v66_v52 = vmul.f32 %v50_v34, %v381_v2 }
  0x32   :  { %249 = vpow2.f32 %v104_v27  ;;  %v67_v53 = vmul.f32 %v51_v35, %v383_v3  ;;  %v68_v56 = vmul.f32 %v52_v38, %v385_v4  ;;  %v69_v57 = vmul.f32 %v53_v39, %v387_v5 }
  0x33   :  { %251 = vpow2.f32 %v106_v29  ;;  %v70_v58 = vmul.f32 %v54_v40, %v389_v6  ;;  %v416_v61 = vsub.f32 %v56_v36, %v64_v43  ;;  %v419_v1 = vmul.f32 %v55_v50, %v392_v8 }
  0x34   :  { %253 = vpow2.f32 %v108_v30  ;;  %v421_v7 = vsub.f32 %v57_v37, %v65_v51  ;;  %v74_v9 = vsub.f32 %v58_v41, %v66_v52  ;;  %v423_v10 = vsub.f32 %v59_v42, %v67_v53 }
  0x35   :  { %255 = vpow2.f32 %v110_v31  ;;  %v425_v11 = vsub.f32 %v60_v45, %v68_v56  ;;  %v429_v17 = vsub.f32 %v61_v46, %v69_v57  ;;  %v437_v25 = vsub.f32 %v62_v47, %v70_v58 }
  0x38   :  { %v242_v44 = vpop.eup %241 }
  0x39   :  { %v244_v49 = vpop.eup %243  ;;  %v112_v54 = vadd.f32 1.0, %v242_v44  ;;  %v115_v62 = vmul.f32 -0.5, %v242_v44  ;;  %v118_v2 = vand.u32 2147483647, %v242_v44 }
  0x3a   :  { %v246_v55 = vpop.eup %245  ;;  %v121_v59 = vadd.f32 1.0, %v244_v49  ;;  %v124_v3 = vmul.f32 -0.5, %v244_v49  ;;  %v127_v12 = vand.u32 2147483647, %v244_v49 }
  0x3b   :  { %v248_v60 = vpop.eup %247  ;;  %257 = vlog2.f32 %v112_v54  ;;  %v130_v63 = vadd.f32 1.0, %v246_v55  ;;  %v133_v4 = vmul.f32 -0.5, %v246_v55  ;;  %v116_v14 = vadd.f32 1.0, %v115_v62 }
  0x3c   :  { %v250_v0 = vpop.eup %249  ;;  %259 = vlog2.f32 %v121_v59  ;;  %v139_v5 = vadd.f32 1.0, %v248_v60  ;;  %v142_v15 = vmul.f32 -0.5, %v248_v60  ;;  %vm431_vm0 = vcmp.lt.f32.partialorder %v118_v2, 0.0004427343 }
  0x3d   :  { %261 = vlog2.f32 %v130_v63  ;;  %v252_v6 = vpop.eup %251  ;;  %v148_v16 = vadd.f32 1.0, %v250_v0  ;;  %v125_v19 = vadd.f32 1.0, %v124_v3  ;;  %v151_v20 = vmul.f32 -0.5, %v250_v0 }
  0x3e   :  { %v427_v13 = vpop.eup %253  ;;  %263 = vlog2.f32 %v139_v5  ;;  %v134_v22 = vadd.f32 1.0, %v133_v4  ;;  %v136_v23 = vand.u32 2147483647, %v246_v55  ;;  %v157_v24 = vadd.f32 1.0, %v252_v6 }
  0x3f   :  { %v435_v21 = vpop.eup %255  ;;  %265 = vlog2.f32 %v148_v16  ;;  %vm439_vm2 = vcmp.lt.f32.partialorder %v127_v12, 0.0004427343  ;;  %v145_v27 = vand.u32 2147483647, %v248_v60  ;;  %v166_v28 = vadd.f32 1.0, %v427_v13 }
  0x40   :  { %v117_v29 = vmul.f32 %v242_v44, %v116_v14  ;;  %v143_v30 = vadd.f32 1.0, %v142_v15  ;;  %267 = vlog2.f32 %v157_v24  ;;  %v160_v31 = vmul.f32 -0.5, %v252_v6 }
  0x41   :  { %v152_v32 = vadd.f32 1.0, %v151_v20  ;;  %v154_v33 = vand.u32 2147483647, %v250_v0  ;;  %269 = vlog2.f32 %v166_v28  ;;  %v175_v34 = vadd.f32 1.0, %v435_v21 }
  0x42   :  { %v126_v36 = vmul.f32 %v244_v49, %v125_v19  ;;  %v135_v37 = vmul.f32 %v246_v55, %v134_v22  ;;  %vm445_vm3 = vcmp.lt.f32.partialorder %v136_v23, 0.0004427343  ;;  %v169_v39 = vmul.f32 -0.5, %v427_v13 }
  0x43   :  { %vm450_vm4 = vcmp.lt.f32.partialorder %v145_v27, 0.0004427343  ;;  %271 = vlog2.f32 %v175_v34  ;;  %v178_v43 = vmul.f32 -0.5, %v435_v21  ;;  %v144_v46 = vmul.f32 %v248_v60, %v143_v30 }
  0x44   :  { %v161_v47 = vadd.f32 1.0, %v160_v31  ;;  %v163_v49 = vand.u32 2147483647, %v252_v6  ;;  %v153_v52 = vmul.f32 %v250_v0, %v152_v32  ;;  %vm457_vm5 = vcmp.lt.f32.partialorder %v154_v33, 0.0004427343 }
  0x45   :  { %v258_v35 = vpop.eup %257  ;;  %v170_v56 = vadd.f32 1.0, %v169_v39  ;;  %v172_v57 = vand.u32 2147483647, %v427_v13  ;;  %v179_v62 = vadd.f32 1.0, %v178_v43  ;;  %v181_v14 = vand.u32 2147483647, %v435_v21 }
  0x46   :  { %v260_v40 = vpop.eup %259  ;;  %v114_v41 = vmul.f32 0.6931472, %v258_v35  ;;  %v162_v2 = vmul.f32 %v252_v6, %v161_v47  ;;  %vm468_vm6 = vcmp.lt.f32.partialorder %v163_v49, 0.0004427343 }
  0x47   :  { %v262_v44 = vpop.eup %261  ;;  %v123_v45 = vmul.f32 0.6931472, %v260_v40  ;;  %vm173_vm7 = vcmp.lt.f32.partialorder %v172_v57, 0.0004427343  ;;  %v180_v23 = vmul.f32 %v435_v21, %v179_v62  ;;  %vm182_vm8 = vcmp.lt.f32.partialorder %v181_v14, 0.0004427343 }
  0x48   :  { %v120_v50 = vsel %vm431_vm0, %v117_v29, %v114_v41  ;;  %v132_v51 = vmul.f32 0.6931472, %v262_v44  ;;  %v264_v54 = vpop.eup %263 }
  0x49   :  { %v129_v55 = vsel %vm439_vm2, %v126_v36, %v123_v45  ;;  %v184_v58 = vadd.f32 %v120_v50, %v416_v61  ;;  %v141_v60 = vmul.f32 0.6931472, %v264_v54  ;;  %v266_v0 = vpop.eup %265 }
  0x4a   :  { %v138_v59 = vsel %vm445_vm3, %v135_v37, %v132_v51  ;;  %v185_v63 = vadd.f32 %v129_v55, %v421_v7  ;;  %v150_v61 = vmul.f32 0.6931472, %v266_v0  ;;  %v268_v16 = vpop.eup %267  ;;  %v171_v7 = vmul.f32 %v427_v13, %v170_v56 }
  0x4b   :  { %v186_v4 = vadd.f32 %v138_v59, %v74_v9  ;;  %v193_v5 = vsel %vm192_vm1, %v184_v58, 0.0  ;;  %v147_v12 = vsel %vm450_vm4, %v144_v46, %v141_v60  ;;  %v270_v20 = vpop.eup %269  ;;  %v159_v22 = vmul.f32 0.6931472, %v268_v16 }
  0x4c   :  { %v194_v15 = vsel %vm192_vm1, %v185_v63, 0.0  ;;  %v187_v6 = vadd.f32 %v147_v12, %v423_v10  ;;  %v156_v9 = vsel %vm457_vm5, %v153_v52, %v150_v61  ;;  %v168_v24 = vmul.f32 0.6931472, %v270_v20 }
  0x4d   :  { %v195_v18 = vadd.f32 %v194_v15, %v193_v5  ;;  %v196_v19 = vsel %vm192_vm1, %v186_v4, 0.0  ;;  %v188_v26 = vadd.f32 %v156_v9, %v425_v11  ;;  %v272_v13 = vpop.eup %271  ;;  %v79_v10 = vsub.f32 %v63_v48, %v419_v1 }
  0x4e   :  { %v198_v28 = vsel %vm192_vm1, %v187_v6, 0.0  ;;  %v165_v29 = vsel %vm468_vm6, %v162_v2, %v159_v22  ;;  %v174_v30 = vsel %vm173_vm7, %v171_v7, %v168_v24  ;;  %v177_v31 = vmul.f32 0.6931472, %v272_v13 }
  0x4f   :  { %v197_v27 = vadd.f32 %v196_v19, %v195_v18  ;;  %v189_v32 = vadd.f32 %v165_v29, %v429_v17  ;;  %v190_v33 = vadd.f32 %v174_v30, %v437_v25  ;;  %v200_v11 = vsel %vm192_vm1, %v188_v26, 0.0 }
  0x50   :  { %v183_v34 = vsel %vm182_vm8, %v180_v23, %v177_v31 }
  0x51   :  { %v199_v21 = vadd.f32 %v198_v28, %v197_v27  ;;  %v202_v36 = vsel %vm192_vm1, %v189_v32, 0.0  ;;  %v191_v37 = vadd.f32 %v183_v34, %v79_v10  ;;  %v204_v8 = vsel %vm192_vm1, %v190_v33, 0.0 }
  0x53   :  { %v201_v35 = vadd.f32 %v200_v11, %v199_v21  ;;  %v206_v1 = vsel %vm192_vm1, %v191_v37, 0.0 }
  0x55   :  { %v203_v48 = vadd.f32 %v202_v36, %v201_v35 }
  0x57   :  { %v205_v38 = vadd.f32 %v204_v8, %v203_v48 }
  0x59   :  { %v207_v39 = vadd.f32 %v206_v1, %v205_v38 }
  0x5b   :  { %208 = vadd.xlane.f32.xlu0 %v207_v39 }
  0xe8   :  { %v209_v40 = vpop.xlane.xlu0 %208 }
  0xe9   :  { %v210_v17 = vrot.slane %v209_v40, 4 }
  0xeb   :  { %v211_v41 = vadd.f32 %v210_v17, %v209_v40 }
  0xed   :  { %v212_v42 = vrot.slane %v211_v41, 2 }
  0xef   :  { %v213_v25 = vadd.f32 %v212_v42, %v211_v41 }
  0xf1   :  { %v214_v43 = vrot.slane %v213_v25, 1 }
  0xf3   :  { %v215_v44 = vadd.f32 %v214_v43, %v213_v25 }
  0xf5   :  { %234 = vpush %v215_v44 }
 0x126   :  { %s235_s1 = spop %234 }
 0x127   :  { %218 = sst [smem:[#allocation7]] %s235_s1 }
 0x128   :  { %326 = shalt.err (!%p323_p4)
}
 0x129   :  { %s337_s13 = smov [#allocation7]  }
 0x12a   :  { %226 = dma.smem_to_hbm %s337_s13, 16, %s510_s2, [#allocation4]  }
 0x12b   :  { %331 = dma.done.wait [#allocation4], 16  }
 0x12c   :  { %332 = vsyncadd [#allocation4], 4294967280 }
 0x12d   :  { %230 = sfence }
 0x12e   :  { %231 = vsyncpa [#allocation3], 1 }
 0x12f   :  { %232 = vsyncpa [#allocation6], 1 }
 0x130   :  { %233 = vsyncpa [#allocation4], 1 }

</bundles_post_ra>
